<compile_context>
chip_gen: v7x
topology: tpu7x:2x2x1
jax: 0.10.0
libtpu: 0.0.40
codegen_flags: <defaults>
</compile_context>

<pallas_src>
import numpy as np
import jax
import jax.numpy as jnp
from jax import lax
from jax.experimental import pallas as pl
from jax.experimental.pallas import tpu as pltpu


def _round_up(x, m):
    return ((x + m - 1) // m) * m


def _choose_b_tile(n_bags, s_pad, target_rows=256):
    """Bags per grid step: ~128-256 MXU rows per step (v5e fills at 128, v6e/v7x
    at 256), multiple of 8 (sublane-aligned 2D output block), and small enough
    that the grid keeps >= 2 steps when n_bags allows (v7x has 2 TCs)."""
    bt = max(8, (target_rows // max(s_pad, 1)) // 8 * 8)
    if n_bags > 8:
        bt = min(bt, _round_up((n_bags + 1) // 2, 8))
    bt = min(bt, _round_up(n_bags, 8))
    return bt


# ----------------------------- Pallas kernel --------------------------------
def extractor_multir_att_kernel(sent_ref, l2_ref, mask_ref, o_ref):
    # sent_ref: (B_TILE, S_pad, D_pad)  bf16  zero-padded sentences of B_TILE bags
    # l2_ref  : (2*C_pad, D_pad)        bf16  rows [0:C)  = label * A  (att logits RHS)
    #                                         rows [C:2C) = label      (score RHS)
    # mask_ref: (B_TILE, S_pad)         f32   1.0 valid sentence / 0.0 padding
    # o_ref   : (B_TILE, C_pad)         f32   per-bag scores (bias added in wrapper)
    b_tile, s_pad, d_pad = sent_ref.shape
    c2 = l2_ref.shape[0]
    c_pad = c2 // 2

    x = sent_ref[...].reshape(b_tile * s_pad, d_pad)
    # Single fused MXU call per grid step: x @ [label*A ; label]^T, f32 accum.
    both = lax.dot_general(x, l2_ref[...], (((1,), (1,)), ((), ())),
                           preferred_element_type=jnp.float32)   # (B*S, 2*C)
    both = both.reshape(b_tile, s_pad, c2)
    logits = both[:, :, :c_pad]      # (B, S, C) attention logits (x*A) @ L^T
    x_lab = both[:, :, c_pad:]       # (B, S, C) per-sentence class scores x @ L^T

    # Masked softmax over the sentence axis, re-associated so the divide is one
    # (B, C) reciprocal instead of S*C divides:
    #   scores[b, c] = sum_s softmax_s(logits)[b, s, c] * x_lab[b, s, c]
    # Padded x rows give logits == 0, so the unmasked max is >= the valid max
    # (stability preserved without a first where); padded e is zeroed by mask.
    mask = mask_ref[...][:, :, None]                    # (B, S, 1)
    m = jnp.max(logits, axis=1, keepdims=True)          # (B, 1, C)
    e = jnp.exp(logits - m) * mask                      # (B, S, C)
    denom = jnp.sum(e, axis=1)                          # (B, C)
    num = jnp.sum(e * x_lab, axis=1)                    # (B, C)
    inv = pl.reciprocal(jnp.maximum(denom, 1e-30), approx=True)  # 0-count bag -> 0
    o_ref[...] = num * inv


# ------------------------------ JAX wrapper ----------------------------------
def extractor_forward(bags, params, *, target_rows=256):
    """bags: list of (n_i, input_size) float32 arrays (one per bag).
    Returns (feature, batch_scores) == (cat(bags, 0), (n_bags, n_class))."""
    label = np.asarray(params["label_embed"], dtype=np.float32)   # (n_class, D)
    a_vec = np.asarray(params["A"], dtype=np.float32)             # (D,)
    bias = jnp.asarray(params["bias"], dtype=jnp.float32)         # (1, n_class)
    n_class, input_size = label.shape
    n_bags = len(bags)

    max_s = max(int(bg.shape[0]) for bg in bags)
    S_pad = max(16, _round_up(max_s, 16))                # bf16 sublane tile (16,128)
    D_pad = max(128, _round_up(input_size, 128))         # lane-dense contraction
    C_pad = max(128, _round_up(n_class, 128))            # lane-dense output
    B_TILE = _choose_b_tile(n_bags, S_pad, target_rows)
    n_bags_pad = _round_up(n_bags, B_TILE)
    n_steps = n_bags_pad // B_TILE

    # One numpy buffer for padding (no per-bag XLA pad/stack ops on the host).
    bags_np = [np.asarray(bg, dtype=np.float32) for bg in bags]
    sent_np = np.zeros((n_bags_pad, S_pad, D_pad), dtype=np.float32)
    mask_np = np.zeros((n_bags_pad, S_pad), dtype=np.float32)
    for i, bg in enumerate(bags_np):
        n = bg.shape[0]
        sent_np[i, :n, :input_size] = bg
        mask_np[i, :n] = 1.0

    # Stacked RHS: rows [0:C) = label * A (attention), rows [C:2C) = label.
    l2_np = np.zeros((2 * C_pad, D_pad), dtype=np.float32)
    l2_np[:n_class, :input_size] = label * a_vec[None, :]
    l2_np[C_pad:C_pad + n_class, :input_size] = label

    # bf16 MXU inputs; softmax / accumulation remain f32 inside the kernel.
    sent = jnp.asarray(sent_np, dtype=jnp.bfloat16)
    l2 = jnp.asarray(l2_np, dtype=jnp.bfloat16)
    mask = jnp.asarray(mask_np)

    cost = pl.CostEstimate(
        flops=2 * n_bags_pad * S_pad * D_pad * (2 * C_pad),
        transcendentals=n_bags_pad * S_pad * C_pad + n_bags_pad * C_pad,
        bytes_accessed=2 * (sent.size + n_steps * l2.size)
                       + 4 * (mask.size + n_bags_pad * C_pad),
    )

    out = pl.pallas_call(
        extractor_multir_att_kernel,
        out_shape=jax.ShapeDtypeStruct((n_bags_pad, C_pad), jnp.float32),
        grid_spec=pltpu.PrefetchScalarGridSpec(
            num_scalar_prefetch=0,
            grid=(n_steps,),
            in_specs=[
                pl.BlockSpec((B_TILE, S_pad, D_pad), lambda i: (i, 0, 0)),
                pl.BlockSpec((2 * C_pad, D_pad), lambda i: (0, 0)),
                pl.BlockSpec((B_TILE, S_pad), lambda i: (i, 0)),
            ],
            out_specs=pl.BlockSpec((B_TILE, C_pad), lambda i: (i, 0)),
        ),
        compiler_params=pltpu.CompilerParams(
            dimension_semantics=("parallel",)),
        cost_estimate=cost,
    )(sent, l2, mask)

    # Strip bag / class padding; bias added once here (constant over sentences).
    batch_scores = out[:n_bags, :n_class] + bias
    feature = jnp.concatenate([jnp.asarray(bg) for bg in bags_np], axis=0)
    return feature, batch_scores


# --------------------------- deterministic params ----------------------------
def make_params(input_size, n_class):
    # Same seeds / init as the PyTorch module.
    label_embed = np.asarray(np.random.RandomState(201).uniform(
        -0.1, 0.1, size=(n_class, input_size)), dtype=np.float32)
    A = np.asarray(np.random.RandomState(211).uniform(
        -0.1, 0.1, size=input_size), dtype=np.float32)
    bias = np.zeros((1, n_class), dtype=np.float32)
    return {"label_embed": jnp.asarray(label_embed),
            "A": jnp.asarray(A),
            "bias": jnp.asarray(bias)}


# --------------------------------- main ---------------------------------------
if __name__ == "__main__":
    input_size, n_class = 32, 5
    bag_sizes = [4, 7, 2, 5, 9, 3, 6, 1, 8, 4, 2, 5]    # 12 ragged bags -> 2 grid steps

    params = make_params(input_size, n_class)

    key = jax.random.PRNGKey(0)
    keys = jax.random.split(key, len(bag_sizes))
    bags = [0.1 * jax.random.normal(k, (s, input_size), dtype=jnp.float32)
            for k, s in zip(keys, bag_sizes)]

    feature, scores = extractor_forward(bags, params)
    feature, scores = jax.block_until_ready((feature, scores))

    # Pure-JAX f32 reference implementing the original per-bag torch math.
    def multir_att_ref(x):
        lab = params["label_embed"]
        score = (x * params["A"]) @ lab.T               # (n_sent, n_class)
        weight = jax.nn.softmax(score.T, axis=1)        # (n_class, n_sent)
        reduce_bag = weight @ x                         # (n_class, D)
        s = jnp.sum(reduce_bag * lab, axis=1, keepdims=True)
        return s.T + params["bias"]                     # (1, n_class)

    ref_scores = jnp.concatenate([multir_att_ref(bg) for bg in bags], axis=0)
    ref_feature = jnp.concatenate(bags, axis=0)

    assert scores.shape == (len(bag_sizes), n_class)
    assert feature.shape == (sum(bag_sizes), input_size)
    np.testing.assert_allclose(np.asarray(feature), np.asarray(ref_feature),
                               rtol=1e-6, atol=1e-6)
    # bf16 MXU inputs + approx reciprocal -> looser tolerance than pure f32.
    np.testing.assert_allclose(np.asarray(scores), np.asarray(ref_scores),
                               rtol=3e-2, atol=2e-3)
    print("KERNEL_OK")
</pallas_src>

<mosaic_0001>
module attributes {stable_mosaic.version = 11 : i64} {
  func.func @extractor_multir_att_kernel(%arg0: i32, %arg1: memref<8x16x128xbf16, #tpu.memory_space<vmem>>, %arg2: memref<256x128xbf16, #tpu.memory_space<vmem>>, %arg3: memref<8x16xf32, #tpu.memory_space<vmem>>, %arg4: memref<8x128xf32, #tpu.memory_space<vmem>>) attributes {dimension_semantics = [#tpu.dimension_semantics<parallel>], iteration_bounds = array<i64: 2>, scalar_prefetch = 0 : i64, scratch_operands = 0 : i64, tpu.core_type = #tpu.core_type<tc>, window_params = [{transform_indices = @transform_0, window_bounds = array<i64: 8, 16, 128>}, {pipeline_mode = #tpu.pipeline_mode<synchronous>, transform_indices = @transform_1, window_bounds = array<i64: 256, 128>}, {transform_indices = @transform_2, window_bounds = array<i64: 8, 16>}, {transform_indices = @transform_3, window_bounds = array<i64: 8, 128>}]} {
    %c0 = arith.constant 0 : index
    %c0_0 = arith.constant 0 : index
    %c0_1 = arith.constant 0 : index
    %0 = vector.load %arg1[%c0, %c0_0, %c0_1] : memref<8x16x128xbf16, #tpu.memory_space<vmem>>, vector<8x16x128xbf16>
    %1 = vector.shape_cast %0 : vector<8x16x128xbf16> to vector<128x128xbf16>
    %c0_2 = arith.constant 0 : index
    %c0_3 = arith.constant 0 : index
    %2 = vector.load %arg2[%c0_2, %c0_3] : memref<256x128xbf16, #tpu.memory_space<vmem>>, vector<256x128xbf16>
    %cst = arith.constant dense<0.000000e+00> : vector<128x256xf32>
    %3 = tpu.matmul %1, %2, %cst {dimension_numbers = #tpu.dot_dimension_numbers<[1], [1], [0], [0], [0, 0, 1, 0], [], []>} : vector<128x128xbf16>, vector<256x128xbf16>, vector<128x256xf32> -> vector<128x256xf32>
    %4 = vector.shape_cast %3 : vector<128x256xf32> to vector<8x16x256xf32>
    %5 = vector.extract_strided_slice %4 {offsets = [0, 0, 0], sizes = [8, 16, 128], strides = [1, 1, 1]} : vector<8x16x256xf32> to vector<8x16x128xf32>
    %6 = vector.extract_strided_slice %4 {offsets = [0, 0, 128], sizes = [8, 16, 128], strides = [1, 1, 1]} : vector<8x16x256xf32> to vector<8x16x128xf32>
    %c0_4 = arith.constant 0 : index
    %c0_5 = arith.constant 0 : index
    %7 = vector.load %arg3[%c0_4, %c0_5] : memref<8x16xf32, #tpu.memory_space<vmem>>, vector<8x16xf32>
    %8 = vector.shape_cast %7 : vector<8x16xf32> to vector<8x16x1xf32>
    %cst_6 = arith.constant dense<0xFF800000> : vector<8x128xf32>
    %9 = vector.multi_reduction <maximumf>, %5, %cst_6 [1] : vector<8x16x128xf32> to vector<8x128xf32>
    %10 = vector.shape_cast %9 : vector<8x128xf32> to vector<8x1x128xf32>
    %11 = vector.broadcast %10 : vector<8x1x128xf32> to vector<8x16x128xf32>
    %12 = arith.subf %5, %11 : vector<8x16x128xf32>
    %13 = math.exp %12 : vector<8x16x128xf32>
    %14 = vector.broadcast %8 : vector<8x16x1xf32> to vector<8x16x128xf32>
    %15 = arith.mulf %13, %14 : vector<8x16x128xf32>
    %cst_7 = arith.constant dense<0.000000e+00> : vector<8x128xf32>
    %16 = vector.multi_reduction <add>, %15, %cst_7 [1] : vector<8x16x128xf32> to vector<8x128xf32>
    %17 = arith.mulf %15, %6 : vector<8x16x128xf32>
    %cst_8 = arith.constant dense<0.000000e+00> : vector<8x128xf32>
    %18 = vector.multi_reduction <add>, %17, %cst_8 [1] : vector<8x16x128xf32> to vector<8x128xf32>
    %cst_9 = arith.constant 1.000000e-30 : f32
    %19 = vector.broadcast %cst_9 : f32 to vector<8x128xf32>
    %20 = arith.maximumf %16, %19 : vector<8x128xf32>
    %21 = tpu.reciprocal %20 {approx = true} : vector<8x128xf32> -> vector<8x128xf32>
    %22 = arith.mulf %18, %21 : vector<8x128xf32>
    %c0_10 = arith.constant 0 : index
    %c0_11 = arith.constant 0 : index
    %23 = vector.load %arg4[%c0_10, %c0_11] : memref<8x128xf32, #tpu.memory_space<vmem>>, vector<8x128xf32>
    tpu.vector_store %arg4[%c0_10, %c0_11], %22 {strides = array<i32>} : memref<8x128xf32, #tpu.memory_space<vmem>>, vector<8x128xf32>,
    return
  }
  func.func @transform_0(%arg0: i32) -> (i32, i32, i32) {
    %c0_i32 = arith.constant 0 : i32
    %c0_i32_0 = arith.constant 0 : i32
    %c0_i32_1 = arith.constant 0 : i32
    return %arg0, %c0_i32, %c0_i32_0 : i32, i32, i32
  }
  func.func @transform_1(%arg0: i32) -> (i32, i32) {
    %c0_i32 = arith.constant 0 : i32
    %c0_i32_0 = arith.constant 0 : i32
    %c0_i32_1 = arith.constant 0 : i32
    return %c0_i32, %c0_i32_0 : i32, i32
  }
  func.func @transform_2(%arg0: i32) -> (i32, i32) {
    %c0_i32 = arith.constant 0 : i32
    %c0_i32_0 = arith.constant 0 : i32
    return %arg0, %c0_i32 : i32, i32
  }
  func.func @transform_3(%arg0: i32) -> (i32, i32) {
    %c0_i32 = arith.constant 0 : i32
    %c0_i32_0 = arith.constant 0 : i32
    return %arg0, %c0_i32 : i32, i32
  }
}

</mosaic_0001>

<bundles_post_ra>
// kernel: tpu_custom_call.1
= control target key start
LH: loop header
LB: loop body
LE: loop exit
PB: predicated region body
PF: predicated region fallthrough
CT: control target
= control target key end

     0   :  { %8 = vsyncpa [#allocation3], 0  ;;  %s1855_s0 = inlined_call_operand.hbm [shape: bf16[16,16,128], index: 0, kind: input, shape index: {}]   ;;  %s1856_s1 = inlined_call_operand.hbm [shape: bf16[256,128], index: 1, kind: input, shape index: {}]   ;;  %s1857_s2 = inlined_call_operand.hbm [shape: f32[16,16], index: 2, kind: input, shape index: {}]   ;;  %s1858_s3 = inlined_call_operand.hbm [shape: f32[16,128], index: 3, kind: output, shape index: {}]  }
   0x1   :  { %10 = vsyncpa [#allocation3 + $0x1], 0 }
   0x2   :  { %11 = vsyncpa [#allocation6], 0 }
   0x3   :  { %12 = vsyncpa [#allocation4], 0 }
   0x4   :  { %14 = vsyncpa [#allocation4 + $0x1], 0  ;;  %s1464_s12 = smov 0   ;;  %s1466_s13 = smov 0  }
   0x5   :  { %s1468_s14 = smov 0   ;;  %s1470_s15 = smov 0  }
   0x6 LB: > { %s1485_s16 = sadd.s32 1, %s1436_s15   ;;  %s27_s17 = sadd.s32 1, %s1432_s14  ;;  %s1436_s15 = sphi %s1470_s15, %s1883_s15   ;;  %s1432_s14 = sphi %s1468_s14, %s1882_s14   ;;  %s1428_s13 = sphi %s1466_s13, %s1881_s13   ;;  %s1424_s12 = sphi %s1464_s12, %s1880_s12  }
   0x7   : > { %s24_s18 = ssub.s32 %s1436_s15, %s1485_s16  ;;  %p34_p0 = scmp.ne.s32.totalorder %s1432_s14, %s1428_s13 }
   0x8   : > { %p25_p1 = scmp.eq.s32.totalorder %s24_s18, 0  ;;  %p35_p2 = scmp.eq.s32.totalorder %s1436_s15, 0 }
   0x9   : > { %p1164_p5 = scmp.lt.s32.totalorder %s1436_s15, 2  ;;  %s150_s20 = sand.u32 1, %s1436_s15  }
   0xa   : > { %s1494_s19 = scalar_select %p25_p1, %s1432_s14, %s27_s17  }
   0xb   : > { %p36_p3 = por %p35_p2, %p34_p0  ;;  %s152_s21 = sand.u32 1, %s1432_s14  }
   0xc   : > { %s1049_s22 = sshll.u32 %s152_s21, 6  ;;  %s1089_s23 = sshll.u32 %s1436_s15, 10 }
   0xd   : > { %s1509_s26 = scalar_lea.hbm %s1855_s0, %s1089_s23  ;;  %s154_s27 = scalar_lea.vmem [#allocation2], %s1049_s22 }
   0xe   : > { %s162_s28 = sshll.u32 %s154_s27, 4  ;;  %p1511_p6 = pnand %p1164_p5, %p36_p3  ;;  %s1515_s28 = int_to_ptr.vmem [resolvable:$true] %s162_s28 }
   0xf   : > { %s1517_s30 = scalar_lea.sflag [#allocation3], %s150_s20  ;;  %s1274_s4 = scalar_lea.hbm %s1509_s26, 1024 }
  0x10   : > { %p1275_p7 = scmp.ne.s32.totalorder %s1509_s26, %s1274_s4  ;;  %p1276_p8 = pneg %p1511_p6 }
  0x11   : > { %s1279_s7 = scalar_lea.hbm %s1855_s0, 2048  ;;  %p1280_p11 = scmp.lt.u32.totalorder %s1509_s26, %s1855_s0 }
  0x12   : > { %p1277_p9 = pnand %p1276_p8, %p1275_p7  ;;  %p1281_p12 = scmp.lt.u32.totalorder %s1279_s7, %s1274_s4 }
  0x13   : > { %p1283_p1 = scmp.lt.u32.totalorder %s1274_s4, %s1509_s26 }
  0x14   : > { %p1278_p10 = pneg %p1277_p9  ;;  %p1282_p13 = por %p1281_p12, %p1280_p11 }
  0x16   : > { %p1284_p2 = por %p1283_p1, %p1282_p13 }
  0x18   : > { %p1285_p3 = pnand %p1284_p2, %p1278_p10 }
  0x1a   : > { %1288 = shalt.err (!%p1285_p3)
}
  0x1b   : > { %s1289_s10 = scalar_lea.vmem %s1515_s28, 1024  ;;  %s1438_s11 = smov [#allocation2]  }
  0x1c   : > { %p1290_p5 = scmp.ne.s32.totalorder %s1515_s28, %s1289_s10  ;;  %s1294_s17 = sshll.u32 %s1438_s11, 4  ;;  %s1295_s17 = int_to_ptr.vmem [resolvable:$false] %s1294_s17 }
  0x1d   : > { %s1296_s18 = scalar_lea.vmem %s1295_s17, 2048  ;;  %p1297_p4 = scmp.lt.s32.totalorder %s1515_s28, %s1295_s17 }
  0x1e   : > { %p1292_p7 = pnand %p1290_p5, %p1276_p8  ;;  %p1298_p11 = scmp.lt.s32.totalorder %s1296_s18, %s1289_s10 }
  0x20   : > { %p1293_p9 = pneg %p1292_p7  ;;  %p1299_p12 = por %p1298_p11, %p1297_p4 }
  0x22   : > { %p1300_p13 = pnand %p1299_p12, %p1293_p9 }
  0x24   : > { %1303 = shalt.err (!%p1300_p13)
}
  0x25   : > { %s1864_s20 = smov 64   ;;  %s1440_s22 = smov 4  }
  0x26   : > { %1155 = dma.hbm_to_vmem [thread:$0]  (!%p1511_p6), %s1509_s26, 1024, %s1515_s28, %s1517_s30, %s1864_s20, %s1864_s20, %s1440_s22  }
  0x27   : > { %s1549_s23 = sadd.s32 4294967295, %s1436_s15   ;;  %s1045_s24 = sadd.s32 4294967294, %s1436_s15  }
  0x28   : > { %p40_p4 = scmp.ne.s32.totalorder %s1428_s13, %s1424_s12  ;;  %p1859_p10 = scmp.eq.s32.totalorder %s1549_s23, 0 }
  0x29   : > { %p111_p1 = scmp.eq.s32.totalorder %s1549_s23, 1  ;;  %p117_p2 = scmp.eq.s32.totalorder %s1045_s24, 1 }
  0x2a   : > { %p1558_p3 = por %p1859_p10, %p40_p4  ;;  %p1046_p5 = scmp.ge.s32.totalorder %s1436_s15, 1 }
  0x2b   : > { %p1566_p7 = por %p111_p1, %p34_p0  ;;  %p1570_p9 = por %p117_p2, %p40_p4 }
  0x2c   : > { %s1866_s25 = scalar_select %p1558_p3, 1, 0 }
  0x2d   : > { %s1867_s26 = scalar_select %p1566_p7, 1, 0 }
  0x2e   : > { %s1868_s27 = scalar_select %p1570_p9, 1, 0 }
  0x2f   : > { %p124_p11 = scmp.lt.s32.totalorder %s1436_s15, 3  ;;  %s1053_s28 = sshll.u32 %s152_s21, 3 }
  0x30   : > { %s1441_s5 = smov [#allocation5]   ;;  %s1054_s7 = sshll.u32 %s1436_s15, 7 }
  0x31   : > { %p1577_p12 = pnand %p1046_p5, %p124_p11  ;;  %s136_s6 = sshll.u32 %s1441_s5, 4  ;;  %s1581_s6 = int_to_ptr.vmem [resolvable:$true] %s136_s6 }
  0x32   : > { %s1589_s10 = scalar_lea.hbm %s1857_s2, %s1054_s7  ;;  %s176_s21 = scalar_lea.vmem [#allocation7], %s1053_s28 }
  0x33   : > { %s1869_s4 = scalar_select %p1577_p12, 1, 0 }
  0x34   : > { %p1148_p0 = pneg %p1577_p12  ;;  %s183_s11 = sshll.u32 %s176_s21, 4  ;;  %s184_s11 = int_to_ptr.vmem [resolvable:$true] %s183_s11 }
  0x35   : > { %s1304_s18 = scalar_lea.hbm %s1589_s10, 128  ;;  %s1309_s7 = scalar_lea.hbm %s1857_s2, 256 }
  0x36   : > { %p1593_p13 = pnand %p1148_p0, %p1859_p10  ;;  %p1305_p4 = scmp.ne.s32.totalorder %s1589_s10, %s1304_s18 }
  0x37   : > { %p1310_p5 = scmp.lt.u32.totalorder %s1589_s10, %s1857_s2  ;;  %p1311_p11 = scmp.lt.u32.totalorder %s1309_s7, %s1304_s18 }
  0x38   : > { %s1870_s17 = scalar_select %p1593_p13, 1, 0 }
  0x39   : > { %p1307_p1 = pnand %p1305_p4, %p1276_p8  ;;  %p1312_p0 = por %p1311_p11, %p1310_p5 }
  0x3a   : > { %p1313_p10 = scmp.lt.u32.totalorder %s1304_s18, %s1589_s10 }
  0x3b   : > { %p1308_p2 = pneg %p1307_p1 }
  0x3c   : > { %p1314_p9 = por %p1313_p10, %p1312_p0 }
  0x3e   : > { %p1315_p7 = pnand %p1314_p9, %p1308_p2 }
  0x40   : > { %1318 = shalt.err (!%p1315_p7)
}
  0x41   : > { %s1319_s28 = scalar_lea.vmem %s184_s11, 128  ;;  %s1442_s21 = smov [#allocation7]  }
  0x42   : > { %p1320_p3 = scmp.ne.s32.totalorder %s184_s11, %s1319_s28  ;;  %s1324_s24 = sshll.u32 %s1442_s21, 4  ;;  %s1325_s24 = int_to_ptr.vmem [resolvable:$false] %s1324_s24 }
  0x43   : > { %s1326_s5 = scalar_lea.vmem %s1325_s24, 256  ;;  %p1327_p12 = scmp.lt.s32.totalorder %s184_s11, %s1325_s24 }
  0x44   : > { %p1322_p4 = pnand %p1320_p3, %p1276_p8  ;;  %p1328_p13 = scmp.lt.s32.totalorder %s1326_s5, %s1319_s28 }
  0x46   : > { %p1323_p1 = pneg %p1322_p4  ;;  %p1329_p5 = por %p1328_p13, %p1327_p12 }
  0x48   : > { %p1330_p11 = pnand %p1329_p5, %p1323_p1 }
  0x4a   : > { %1333 = shalt.err (!%p1330_p11)
}
  0x4b   : > { %1158 = dma.hbm_to_vmem [thread:$0]  (!%p1511_p6), %s1589_s10, 128, %s184_s11, %s1517_s30  }
  0x4c   : > { %s1334_s8 = scalar_lea.hbm %s1856_s1, 2048  ;;  %p1871_p10 = scmp.ne.s32.totalorder %s1870_s17, 0 }
  0x4d   : > { %p1335_p8 = scmp.ne.s32.totalorder %s1856_s1, %s1334_s8  ;;  %p1341_p12 = scmp.lt.u32.totalorder %s1334_s8, %s1856_s1 }
  0x4e   : > { %p1336_p3 = pneg %p1871_p10 }
  0x50   : > { %p1337_p7 = pnand %p1336_p3, %p1335_p8 }
  0x52   : > { %p1338_p9 = pneg %p1337_p7 }
  0x54   : > { %p1343_p13 = pnand %p1341_p12, %p1338_p9 }
  0x56   : > { %1346 = shalt.err (!%p1343_p13)
}
  0x57   : > { %s1347_s29 = scalar_lea.vmem %s1581_s6, 2048  ;;  %p1355_p4 = scmp.lt.s32.totalorder %s1581_s6, %s1581_s6 }
  0x58   : > { %p1348_p6 = scmp.ne.s32.totalorder %s1581_s6, %s1347_s29  ;;  %p1356_p1 = scmp.lt.s32.totalorder %s1347_s29, %s1347_s29 }
  0x5a   : > { %p1350_p2 = pnand %p1348_p6, %p1336_p3  ;;  %p1357_p5 = por %p1356_p1, %p1355_p4 }
  0x5c   : > { %p1351_p0 = pneg %p1350_p2 }
  0x5e   : > { %p1358_p11 = pnand %p1357_p5, %p1351_p0 }
  0x60   : > { %1361 = shalt.err (!%p1358_p11)
}
  0x61   : > { %s1872_s30 = smov 64   ;;  %p1873_p8 = scmp.ne.s32.totalorder %s1869_s4, 0 }
  0x62   : > { %1151 = dma.hbm_to_vmem [thread:$0]  (!%p1871_p10), %s1856_s1, 2048, %s1581_s6, [#allocation6], %s1872_s30, %s1872_s30, %s1440_s22  }
  0x63   : > { %192 = sbr.rel (%p1873_p8) target bundleno = 504 (0x1f8), region = 32  ;;  %s194_s11 = sand.u32 (!%p1873_p8), 1, %s1549_s23  }
  0x64   : > { %s1645_s24 = sand.u32 (!%p1873_p8), 1, %s1428_s13   ;;  %s195_s17 = scalar_lea.sflag (!%p1873_p8), [#allocation3], %s194_s11 }
  0x65   : > { %s1056_s5 = sshll.u32 (!%p1873_p8), %s1645_s24, 6  ;;  %p1874_p3 = scmp.ne.s32.totalorder (!%p1873_p8), %s1866_s25, 0 }
  0x66   : > { %s1648_s18 = scalar_lea.vmem (!%p1873_p8), [#allocation2], %s1056_s5 }
  0x6a   : > { %1407 = dma.done.wait (%p1874_p3), %s195_s17, 1024  }
  0x6b   : > { %1409 = vsyncadd (%p1874_p3), %s195_s17, 4294966272  ;;  %p1875_p10 = scmp.eq.s32.totalorder %s1549_s23, 0 }
  0x6d   : > { %1411 = dma.done.wait (%p1875_p10), [#allocation6], 2048   ;;  %p1876_p7 = pmov %p1875_p10 }
  0x6e   : > { %s1058_s22 = sshll.u32 %s1645_s24, 3 }
  0x6f   : > { %1413 = vsyncadd (%p1876_p7), [#allocation6], 4294965248  ;;  %s1661_s4 = scalar_lea.vmem [#allocation7], %s1058_s22 }
  0x70   : > { %1415 = dma.done.wait (%p1874_p3), %s195_s17, 128  }
  0x71   : > { %1417 = vsyncadd (%p1874_p3), %s195_s17, 4294967168  ;;  %v1202_v0 = vld [vmem:[#allocation5 + $0x40] sm:$0xff]   ;;  %v1204_v2 = vld [vmem:[#allocation5 + $0x48] sm:$0xff]   ;;  %v547_v5 = vlaneseq  ;;  %vm915_vm0 = vcmask 1041409   ;;  %vm917_vm1 = vcmask 1042434   ;;  %vm919_vm2 = vcmask 1043459  }
  0x72   : > { %v1203_v1 = vld [vmem:[#allocation5] sm:$0xff]   ;;  %1090 = vmatprep.subr.bf16.mxu0 %v1202_v0  ;;  %1122 = vmatprep.subr.bf16.mxu1 %v1202_v0  ;;  %v1205_v3 = vld [vmem:[#allocation5 + $0x8] sm:$0xff]   ;;  %v1206_v4 = vld [vmem:[#allocation5 + $0x50] sm:$0xff]   ;;  %vm921_vm3 = vcmask 1044484   ;;  %vm923_vm4 = vcmask 1045509   ;;  %vm925_vm5 = vcmask 1046534  }
  0x73   : > { %1091 = vmatpush3.bf16.xpose.msra.mxu0 %v1203_v1  ;;  %1130 = vmatpush3.bf16.xpose.msra.mxu1 %v1203_v1  ;;  %v1207_v6 = vld [vmem:[#allocation5 + $0x10] sm:$0xff]   ;;  %v1208_v7 = vld [vmem:[#allocation5 + $0x58] sm:$0xff]   ;;  %v1668_v8 = vld [vmem:[%s1648_s18] sm:$0xff]   ;;  %v548_v10 = vshrl.u32 %v547_v5, 7  ;;  %s1085_s25 = sshll.u32 %s1549_s23, 7  ;;  %s238_s6 = scalar_lea.vmem [#allocation8], %s1058_s22 }
  0x74   : > { %1092 = vmatprep.subr.bf16.mxu0 %v1204_v2  ;;  %1123 = vmatprep.subr.bf16.mxu1 %v1204_v2  ;;  %v1671_v9 = vld [vmem:[%s1648_s18 + $0x20] sm:$0xff]   ;;  %v1209_v13 = vld [vmem:[#allocation5 + $0x18] sm:$0xff]   ;;  %v1212_v20 = vld [vmem:[#allocation5 + $0x68] sm:$0xff]   ;;  %s945_s7 = sshll.u32 %s238_s6, 4  ;;  %vm927_vm6 = vcmask 1047559   ;;  %s1811_s28 = scalar_lea.hbm %s1858_s3, %s1085_s25  ;;  %s1813_s7 = int_to_ptr.vmem [resolvable:$true] %s945_s7 }
  0x75   : > { %1106 = vmatprep.mubr.bf16.mxu0 %v1668_v8  ;;  %1114 = vmatprep.mubr.bf16.mxu1 %v1671_v9  ;;  %v560_v11 = vsub.s32 1, %v548_v10  ;;  %v549_v12 = vsub.s32 0, %v548_v10  ;;  %v1210_v14 = vld [vmem:[#allocation5 + $0x60] sm:$0xff]   ;;  %v571_v18 = vsub.s32 2, %v548_v10  ;;  %v582_v22 = vsub.s32 3, %v548_v10  ;;  %v1213_v25 = vld [vmem:[#allocation5 + $0x28] sm:$0xff]  }
  0x76   : > { %v546_v15 = vld [vmem:[%s1661_s4] sm:$0xff]  ;;  %v593_v24 = vsub.s32 4, %v548_v10  ;;  %v1214_v26 = vld [vmem:[#allocation5 + $0x70] sm:$0xff]   ;;  %v604_v28 = vsub.s32 5, %v548_v10  ;;  %v615_v30 = vsub.s32 6, %v548_v10  ;;  %v1216_v32 = vld [vmem:[#allocation5 + $0x78] sm:$0xff]  }
  0x77   : > { %v561_v16 = vrot.slane %v546_v15, %v560_v11  ;;  %v550_v17 = vrot.slane %v546_v15, %v549_v12  ;;  %v1211_v19 = vld [vmem:[#allocation5 + $0x20] sm:$0xff]   ;;  %v572_v21 = vrot.slane %v546_v15, %v571_v18  ;;  %v583_v23 = vrot.slane %v546_v15, %v582_v22  ;;  %v1215_v31 = vld [vmem:[#allocation5 + $0x30] sm:$0xff]   ;;  %v1217_v36 = vld [vmem:[#allocation5 + $0x38] sm:$0xff]   ;;  %s932_s21 = scalar_lea.sflag [#allocation4], %s1645_s24  ;;  %s1362_s23 = scalar_lea.vmem %s1813_s7, 128 }
  0x78   : > { %v594_v27 = vrot.slane %v546_v15, %v593_v24  ;;  %v605_v29 = vrot.slane %v546_v15, %v604_v28  ;;  %v616_v33 = vrot.slane %v546_v15, %v615_v30  ;;  %v626_v34 = vsub.s32 7, %v548_v10  ;;  %v1220_v37 = vld [vmem:[%s1648_s18 + $0x8] sm:$0xff]   ;;  %v1222_v39 = vld [vmem:[%s1648_s18 + $0x10] sm:$0xff]   ;;  %v1224_v41 = vld [vmem:[%s1648_s18 + $0x18] sm:$0xff]   ;;  %p1363_p9 = scmp.ne.s32.totalorder %s1813_s7, %s1362_s23  ;;  %p1877_p12 = scmp.ne.s32.totalorder %s1867_s26, 0 }
  0x79   : > { %563 = vbcast.lane.b32.xlu1 %v561_v16, 256  ;;  %552 = vbcast.lane.b32.xlu0 %v550_v17, 256  ;;  %v1221_v38 = vld [vmem:[%s1648_s18 + $0x28] sm:$0xff]   ;;  %v1223_v40 = vld [vmem:[%s1648_s18 + $0x30] sm:$0xff]   ;;  %v1225_v42 = vld [vmem:[%s1648_s18 + $0x38] sm:$0xff]   ;;  %s1443_s29 = smov [#allocation8]  }
  0x7a   : > { %v627_v35 = vrot.slane %v546_v15, %v626_v34  ;;  %p1364_p13 = pnand %p1363_p9, %p1877_p12  ;;  %s1366_s30 = sshll.u32 %s1443_s29, 4  ;;  %s1367_s30 = int_to_ptr.vmem [resolvable:$false] %s1366_s30 }
  0x7b   : > { %1093 = vmatpush3.bf16.xpose.msra.mxu0 %v1205_v3  ;;  %1131 = vmatpush3.bf16.xpose.msra.mxu1 %v1205_v3  ;;  %s1368_s20 = scalar_lea.vmem %s1367_s30, 256  ;;  %p1369_p2 = scmp.lt.s32.totalorder %s1813_s7, %s1367_s30 }
  0x7c   : > { %1094 = vmatprep.subr.bf16.mxu0 %v1206_v4  ;;  %1124 = vmatprep.subr.bf16.mxu1 %v1206_v4  ;;  %p1365_p6 = pneg %p1364_p13  ;;  %p1370_p0 = scmp.lt.s32.totalorder %s1368_s20, %s1362_s23 }
  0x7d   : > { %567 = vbcast.lane.b32.xlu1 %v561_v16, 264  ;;  %556 = vbcast.lane.b32.xlu0 %v550_v17, 264 }
  0x7e   : > { %p1371_p4 = por %p1370_p0, %p1369_p2 }
  0x80   : > { %p1372_p1 = pnand %p1371_p4, %p1365_p6 }
  0x81   : > { %578 = vbcast.lane.b32.xlu1 %v572_v21, 264  ;;  %574 = vbcast.lane.b32.xlu0 %v572_v21, 256 }
  0x83   : > { %1095 = vmatpush3.bf16.xpose.msra.mxu0 %v1207_v6  ;;  %1132 = vmatpush3.bf16.xpose.msra.mxu1 %v1207_v6 }
  0x84   : > { %1096 = vmatprep.subr.bf16.mxu0 %v1208_v7  ;;  %1125 = vmatprep.subr.bf16.mxu1 %v1208_v7 }
  0x85   : > { %589 = vbcast.lane.b32.xlu1 %v583_v23, 264  ;;  %585 = vbcast.lane.b32.xlu0 %v583_v23, 256 }
  0x89   : > { %600 = vbcast.lane.b32.xlu1 %v594_v27, 264  ;;  %596 = vbcast.lane.b32.xlu0 %v594_v27, 256 }
  0x8b   : > { %1097 = vmatpush3.bf16.xpose.msra.mxu0 %v1209_v13  ;;  %1133 = vmatpush3.bf16.xpose.msra.mxu1 %v1209_v13 }
  0x8c   : > { %1098 = vmatprep.subr.bf16.mxu0 %v1210_v14  ;;  %1126 = vmatprep.subr.bf16.mxu1 %v1210_v14 }
  0x8d   : > { %611 = vbcast.lane.b32.xlu1 %v605_v29, 264  ;;  %607 = vbcast.lane.b32.xlu0 %v605_v29, 256 }
  0x91   : > { %622 = vbcast.lane.b32.xlu1 %v616_v33, 264  ;;  %618 = vbcast.lane.b32.xlu0 %v616_v33, 256 }
  0x93   : > { %1099 = vmatpush3.bf16.xpose.msra.mxu0 %v1211_v19  ;;  %1134 = vmatpush3.bf16.xpose.msra.mxu1 %v1211_v19 }
  0x94   : > { %1100 = vmatprep.subr.bf16.mxu0 %v1212_v20  ;;  %1127 = vmatprep.subr.bf16.mxu1 %v1212_v20 }
  0x95   : > { %633 = vbcast.lane.b32.xlu1 %v627_v35, 264  ;;  %629 = vbcast.lane.b32.xlu0 %v627_v35, 256 }
  0x9b   : > { %1101 = vmatpush3.bf16.xpose.msra.mxu0 %v1213_v25  ;;  %1135 = vmatpush3.bf16.xpose.msra.mxu1 %v1213_v25 }
  0x9c   : > { %1102 = vmatprep.subr.bf16.mxu0 %v1214_v26  ;;  %1128 = vmatprep.subr.bf16.mxu1 %v1214_v26 }
  0xa3   : > { %1103 = vmatpush3.bf16.xpose.msra.mxu0 %v1215_v31  ;;  %1136 = vmatpush3.bf16.xpose.msra.mxu1 %v1215_v31 }
  0xa4   : > { %1104 = vmatprep.subr.bf16.mxu0 %v1216_v32  ;;  %1129 = vmatprep.subr.bf16.mxu1 %v1216_v32 }
  0xab   : > { %1105 = vmatpush3.bf16.xpose.msra.mxu0 %v1217_v36  ;;  %1137 = vmatpush3.bf16.xpose.msra.mxu1 %v1217_v36 }
  0xb2   : > { %1107 = vmatmul.mubr.bf16.vlgmr.msra.gmra.mrb[0].mxu0 %v1668_v8  ;;  %1115 = vmatmul.mubr.bf16.vlgmr.msra.gmra.mrb[0].mxu1 %v1671_v9 }
  0xb3   : > { %1108 = vmatprep.mubr.bf16.mxu0 %v1220_v37  ;;  %1116 = vmatprep.mubr.bf16.mxu1 %v1221_v38 }
  0xba   : > { %1109 = vmatmul.mubr.bf16.gmra.mrb[4].mxu0 %v1220_v37  ;;  %1117 = vmatmul.mubr.bf16.gmra.mrb[4].mxu1 %v1221_v38 }
  0xbb   : > { %1110 = vmatprep.mubr.bf16.mxu0 %v1222_v39  ;;  %1118 = vmatprep.mubr.bf16.mxu1 %v1223_v40 }
  0xc2   : > { %1111 = vmatmul.mubr.bf16.gmra.mrb[8].mxu0 %v1222_v39  ;;  %1119 = vmatmul.mubr.bf16.gmra.mrb[8].mxu1 %v1223_v40 }
  0xc3   : > { %1112 = vmatprep.mubr.bf16.mxu0 %v1224_v41  ;;  %1120 = vmatprep.mubr.bf16.mxu1 %v1225_v42 }
  0xca   : > { %1113 = vmatmul.mubr.bf16.gmra.mrb[12].mxu0 %v1224_v41  ;;  %1121 = vmatmul.mubr.bf16.gmra.mrb[12].mxu1 %v1225_v42 }
  0xeb   : > { %v1692_v57 = vpop.permute.xlu1 %563  ;;  %v1694_v58 = vpop.permute.xlu0 %552 }
  0xef   : > { %v1716_v17 = vpop.permute.xlu1 %567  ;;  %v1718_v18 = vpop.permute.xlu0 %556 }
 0x185   : > { %v467_v43 = vpop.f32.mrb[0].mxu0  ;;  %v507_v44 = vpop.f32.mrb[0].mxu1 }
 0x186   : > { %v1684_v45 = vpop.f32.mrb[1].mxu0  ;;  %v1686_v46 = vpop.f32.mrb[1].mxu1 }
 0x187   : > { %v471_v47 = vpop.f32.mrb[2].mxu0  ;;  %v511_v48 = vpop.f32.mrb[2].mxu1 }
 0x188   : > { %v635_v49 = vmax.f32 %v467_v43, %v471_v47  ;;  %v663_v50 = vmax.f32 %v507_v44, %v511_v48  ;;  %v1688_v51 = vpop.f32.mrb[3].mxu0  ;;  %v1690_v52 = vpop.f32.mrb[3].mxu1 }
 0x18a   : > { %v636_v53 = vrot.slane %v635_v49, 4  ;;  %v664_v54 = vrot.slane %v663_v50, 4 }
 0x18c   : > { %v637_v55 = vmax.f32 %v635_v49, %v636_v53  ;;  %v665_v56 = vmax.f32 %v663_v50, %v664_v54  ;;  %v1742_v49 = vpop.permute.xlu0 %574 }
 0x18d   : > { %v1696_v59 = vpop.f32.mrb[4].mxu0  ;;  %v1698_v60 = vpop.f32.mrb[4].mxu1 }
 0x18e   : > { %v638_v61 = vrot.slane %v637_v55, 2  ;;  %v666_v62 = vrot.slane %v665_v56, 2  ;;  %v1700_v63 = vpop.f32.mrb[5].mxu0  ;;  %v1702_v0 = vpop.f32.mrb[5].mxu1 }
 0x18f   : > { %v1704_v1 = vpop.f32.mrb[6].mxu0  ;;  %v1706_v2 = vpop.f32.mrb[6].mxu1 }
 0x190   : > { %v639_v3 = vmax.f32 %v637_v55, %v638_v61  ;;  %v667_v4 = vmax.f32 %v665_v56, %v666_v62  ;;  %v642_v5 = vmax.f32 %v1696_v59, %v1704_v1  ;;  %v670_v6 = vmax.f32 %v1698_v60, %v1706_v2  ;;  %v1712_v7 = vpop.f32.mrb[7].mxu0  ;;  %v1714_v8 = vpop.f32.mrb[7].mxu1 }
 0x192   : > { %v640_v9 = vrot.slane %v639_v3, 1  ;;  %v668_v10 = vrot.slane %v667_v4, 1  ;;  %v643_v11 = vrot.slane %v642_v5, 4  ;;  %v671_v12 = vrot.slane %v670_v6, 4 }
 0x194   : > { %v641_v13 = vmax.f32 %v639_v3, %v640_v9  ;;  %v669_v14 = vmax.f32 %v667_v4, %v668_v10  ;;  %v644_v15 = vmax.f32 %v642_v5, %v643_v11  ;;  %v672_v16 = vmax.f32 %v670_v6, %v671_v12 }
 0x195   : > { %v1720_v19 = vpop.f32.mrb[8].mxu0  ;;  %v1722_v20 = vpop.f32.mrb[8].mxu1 }
 0x196   : > { %v691_v21 = vsub.f32 %v467_v43, %v641_v13  ;;  %v692_v22 = vsub.f32 %v471_v47, %v641_v13  ;;  %v699_v23 = vsub.f32 %v507_v44, %v669_v14  ;;  %v700_v24 = vsub.f32 %v511_v48, %v669_v14  ;;  %v1724_v25 = vpop.f32.mrb[9].mxu0  ;;  %v1726_v26 = vpop.f32.mrb[9].mxu1 }
 0x197   : > { %v645_v27 = vrot.slane %v644_v15, 2  ;;  %v673_v28 = vrot.slane %v672_v16, 2  ;;  %v1728_v29 = vpop.f32.mrb[10].mxu0  ;;  %v1730_v30 = vpop.f32.mrb[10].mxu1 }
 0x198   : > { %v707_v31 = vmul.f32 1.442695, %v691_v21  ;;  %v709_v32 = vmul.f32 1.442695, %v692_v22  ;;  %v649_v33 = vmax.f32 %v1720_v19, %v1728_v29  ;;  %v725_v34 = vmul.f32 1.442695, %v700_v24  ;;  %v1740_v47 = vpop.permute.xlu1 %578 }
 0x199   : > { %v646_v35 = vmax.f32 %v644_v15, %v645_v27  ;;  %v674_v36 = vmax.f32 %v672_v16, %v673_v28  ;;  %v677_v37 = vmax.f32 %v1722_v20, %v1730_v30  ;;  %v1736_v38 = vpop.f32.mrb[11].mxu0  ;;  %v1738_v39 = vpop.f32.mrb[11].mxu1  ;;  %v723_v40 = vmul.f32 1.442695, %v699_v23 }
 0x19a   : > { %1226 = vpow2.f32 %v707_v31  ;;  %v650_v41 = vrot.slane %v649_v33, 4  ;;  %v1770_v31 = vpop.permute.xlu0 %585 }
 0x19b   : > { %1228 = vpow2.f32 %v709_v32  ;;  %v647_v42 = vrot.slane %v646_v35, 1  ;;  %v675_v43 = vrot.slane %v674_v36, 1  ;;  %v678_v44 = vrot.slane %v677_v37, 4 }
 0x19c   : > { %v651_v48 = vmax.f32 %v649_v33, %v650_v41  ;;  %1230 = vpow2.f32 %v725_v34 }
 0x19d   : > { %v648_v50 = vmax.f32 %v646_v35, %v647_v42  ;;  %v676_v53 = vmax.f32 %v674_v36, %v675_v43  ;;  %v679_v54 = vmax.f32 %v677_v37, %v678_v44  ;;  %v1744_v55 = vpop.f32.mrb[12].mxu0  ;;  %v1746_v56 = vpop.f32.mrb[12].mxu1  ;;  %1232 = vpow2.f32 %v723_v40 }
 0x19e   : > { %v652_v61 = vrot.slane %v651_v48, 2  ;;  %v1748_v62 = vpop.f32.mrb[13].mxu0  ;;  %v1750_v3 = vpop.f32.mrb[13].mxu1 }
 0x19f   : > { %v693_v4 = vsub.f32 %v1696_v59, %v648_v50  ;;  %v694_v5 = vsub.f32 %v1704_v1, %v648_v50  ;;  %v701_v6 = vsub.f32 %v1698_v60, %v676_v53  ;;  %v702_v9 = vsub.f32 %v1706_v2, %v676_v53  ;;  %v1756_v10 = vpop.f32.mrb[14].mxu0  ;;  %v1758_v11 = vpop.f32.mrb[14].mxu1 }
 0x1a0   : > { %v653_v12 = vmax.f32 %v651_v48, %v652_v61  ;;  %v680_v13 = vrot.slane %v679_v54, 2  ;;  %v656_v14 = vmax.f32 %v1744_v55, %v1756_v10  ;;  %v684_v15 = vmax.f32 %v1746_v56, %v1758_v11  ;;  %v1764_v16 = vpop.f32.mrb[15].mxu0  ;;  %v1766_v59 = vpop.f32.mrb[15].mxu1 }
 0x1a1   : > { %v711_v1 = vmul.f32 1.442695, %v693_v4  ;;  %v713_v60 = vmul.f32 1.442695, %v694_v5  ;;  %v727_v21 = vmul.f32 1.442695, %v701_v6  ;;  %v1768_v2 = vpop.permute.xlu1 %589 }
 0x1a2   : > { %v729_v22 = vmul.f32 1.442695, %v702_v9  ;;  %v654_v23 = vrot.slane %v653_v12, 1  ;;  %v681_v24 = vmax.f32 %v679_v54, %v680_v13  ;;  %v657_v27 = vrot.slane %v656_v14, 4 }
 0x1a3   : > { %1234 = vpow2.f32 %v711_v1  ;;  %v685_v28 = vrot.slane %v684_v15, 4 }
 0x1a4   : > { %v1227_v32 = vpop.eup %1226  ;;  %1236 = vpow2.f32 %v713_v60  ;;  %v655_v33 = vmax.f32 %v653_v12, %v654_v23  ;;  %v682_v34 = vrot.slane %v681_v24, 1  ;;  %v658_v35 = vmax.f32 %v656_v14, %v657_v27  ;;  %v597_v14 = vpop.permute.xlu0 %596 }
 0x1a5   : > { %v1229_v36 = vpop.eup %1228  ;;  %1238 = vpow2.f32 %v727_v21  ;;  %v739_v37 = vmul.f32 %v1227_v32, %v1694_v58  ;;  %v686_v40 = vmax.f32 %v684_v15, %v685_v28  ;;  %v601_v61 = vpop.permute.xlu1 %600 }
 0x1a6   : > { %1240 = vpow2.f32 %v729_v22  ;;  %v695_v41 = vsub.f32 %v1720_v19, %v655_v33  ;;  %v696_v42 = vsub.f32 %v1728_v29, %v655_v33  ;;  %v683_v43 = vmax.f32 %v681_v24, %v682_v34  ;;  %v1231_v44 = vpop.eup %1230 }
 0x1a7   : > { %v811_v48 = vmul.f32 %v739_v37, %v1684_v45  ;;  %v740_v50 = vmul.f32 %v1229_v36, %v1718_v18  ;;  %v659_v53 = vrot.slane %v658_v35, 2  ;;  %v687_v54 = vrot.slane %v686_v40, 2  ;;  %v1233_v4 = vpop.eup %1232 }
 0x1a8   : > { %v715_v5 = vmul.f32 1.442695, %v695_v41  ;;  %v717_v6 = vmul.f32 1.442695, %v696_v42  ;;  %v703_v58 = vsub.f32 %v1722_v20, %v683_v43  ;;  %v704_v9 = vsub.f32 %v1730_v30, %v683_v43 }
 0x1a9   : > { %v755_v12 = vadd.f32 %v740_v50, %v739_v37  ;;  %v812_v19 = vmul.f32 %v740_v50, %v1688_v51  ;;  %v660_v29 = vmax.f32 %v658_v35, %v659_v53  ;;  %v688_v13 = vmax.f32 %v686_v40, %v687_v54 }
 0x1aa   : > { %1242 = vpow2.f32 %v715_v5  ;;  %v748_v45 = vmul.f32 %v1231_v44, %v601_v61  ;;  %v731_v60 = vmul.f32 1.442695, %v703_v58  ;;  %v747_v23 = vmul.f32 %v1233_v4, %v597_v14 }
 0x1ab   : > { %1244 = vpow2.f32 %v717_v6  ;;  %v756_v18 = vrot.slane %v755_v12, 4  ;;  %v827_v15 = vadd.f32 %v812_v19, %v811_v48  ;;  %v661_v1 = vrot.slane %v660_v29, 1 }
 0x1ac   : > { %v689_v21 = vrot.slane %v688_v13, 1  ;;  %v820_v22 = vmul.f32 %v748_v45, %v1690_v52  ;;  %v733_v24 = vmul.f32 1.442695, %v704_v9  ;;  %v783_v34 = vadd.f32 %v748_v45, %v747_v23 }
 0x1ad   : > { %v1235_v20 = vpop.eup %1234  ;;  %v757_v30 = vadd.f32 %v756_v18, %v755_v12  ;;  %v828_v27 = vrot.slane %v827_v15, 4  ;;  %v662_v28 = vmax.f32 %v660_v29, %v661_v1  ;;  %v819_v35 = vmul.f32 %v747_v23, %v1686_v46  ;;  %v612_v23 = vpop.permute.xlu1 %611 }
 0x1ae   : > { %v1237_v51 = vpop.eup %1236  ;;  %v741_v32 = vmul.f32 %v1235_v20, %v1692_v57  ;;  %v690_v33 = vmax.f32 %v688_v13, %v689_v21  ;;  %1246 = vpow2.f32 %v731_v60 }
 0x1af   : > { %v1239_v36 = vpop.eup %1238  ;;  %v742_v37 = vmul.f32 %v1237_v51, %v1716_v17  ;;  %v758_v40 = vrot.slane %v757_v30, 2  ;;  %v829_v41 = vadd.f32 %v828_v27, %v827_v15  ;;  %v697_v52 = vsub.f32 %v1744_v55, %v662_v28 }
 0x1b0   : > { %v1241_v42 = vpop.eup %1240  ;;  %v813_v43 = vmul.f32 %v741_v32, %v1700_v63  ;;  %v698_v44 = vsub.f32 %v1756_v10, %v662_v28  ;;  %v705_v48 = vsub.f32 %v1746_v56, %v690_v33  ;;  %v706_v57 = vsub.f32 %v1758_v11, %v690_v33 }
 0x1b1   : > { %v762_v50 = vadd.f32 %v742_v37, %v741_v32  ;;  %v814_v53 = vmul.f32 %v742_v37, %v1712_v7  ;;  %v759_v46 = vadd.f32 %v758_v40, %v757_v30  ;;  %v830_v54 = vrot.slane %v829_v41, 2 }
 0x1b2   : > { %v719_v17 = vmul.f32 1.442695, %v697_v52  ;;  %v721_v61 = vmul.f32 1.442695, %v698_v44  ;;  %v855_v4 = vadd.f32 %v820_v22, %v819_v35  ;;  %1248 = vpow2.f32 %v733_v24 }
 0x1b3   : > { %v763_v55 = vrot.slane %v762_v50, 4  ;;  %v834_v5 = vadd.f32 %v814_v53, %v813_v43  ;;  %v760_v6 = vrot.slane %v759_v46, 1  ;;  %v831_v58 = vadd.f32 %v830_v54, %v829_v41 }
 0x1b4   : > { %v1243_v63 = vpop.eup %1242  ;;  %1250 = vpow2.f32 %v719_v17  ;;  %v784_v10 = vrot.slane %v783_v34, 4  ;;  %v856_v19 = vrot.slane %v855_v4, 4  ;;  %v735_v15 = vmul.f32 1.442695, %v705_v48 }
 0x1b5   : > { %v1245_v56 = vpop.eup %1244  ;;  %v764_v9 = vadd.f32 %v763_v55, %v762_v50  ;;  %v835_v11 = vrot.slane %v834_v5, 4  ;;  %v761_v12 = vadd.f32 %v760_v6, %v759_v46  ;;  %v743_v29 = vmul.f32 %v1243_v63, %v1742_v49 }
 0x1b6   : > { %v744_v7 = vmul.f32 %v1245_v56, %v1740_v47  ;;  %1252 = vpow2.f32 %v721_v61  ;;  %v785_v13 = vadd.f32 %v784_v10, %v783_v34  ;;  %v737_v22 = vmul.f32 1.442695, %v706_v57  ;;  %v608_v47 = vpop.permute.xlu0 %607 }
 0x1b7   : > { %v765_v14 = vrot.slane %v764_v9, 2  ;;  %v836_v45 = vadd.f32 %v835_v11, %v834_v5  ;;  %v883_v18 = vmax.f32 %v761_v12, 1e-30  ;;  %v815_v21 = vmul.f32 %v743_v29, %v1724_v25  ;;  %v623_v12 = vpop.permute.xlu1 %622 }
 0x1b8   : > { %v816_v1 = vmul.f32 %v744_v7, %v1736_v38  ;;  %v769_v60 = vadd.f32 %v744_v7, %v743_v29  ;;  %v786_v30 = vrot.slane %v785_v13, 2  ;;  %v832_v27 = vrot.slane %v831_v58, 1  ;;  %v1247_v37 = vpop.eup %1246 }
 0x1b9   : > { %v766_v20 = vadd.f32 %v765_v14, %v764_v9  ;;  %v837_v24 = vrot.slane %v836_v45, 2  ;;  %1254 = vrcp.f32 %v883_v18  ;;  %v857_v51 = vadd.f32 %v856_v19, %v855_v4 }
 0x1ba   : > { %v770_v49 = vrot.slane %v769_v60, 4  ;;  %v841_v28 = vadd.f32 %v816_v1, %v815_v21  ;;  %v787_v34 = vadd.f32 %v786_v30, %v785_v13  ;;  %v750_v35 = vmul.f32 %v1241_v42, %v612_v23  ;;  %v619_v29 = vpop.permute.xlu0 %618 }
 0x1bb   : > { %v767_v32 = vrot.slane %v766_v20, 1  ;;  %v838_v33 = vadd.f32 %v837_v24, %v836_v45  ;;  %1256 = vpow2.f32 %v737_v22  ;;  %v749_v25 = vmul.f32 %v1239_v36, %v608_v47  ;;  %v634_v24 = vpop.permute.xlu1 %633 }
 0x1bc   : > { %v771_v38 = vadd.f32 %v770_v49, %v769_v60  ;;  %v842_v40 = vrot.slane %v841_v28, 4  ;;  %v1249_v41 = vpop.eup %1248  ;;  %1258 = vpow2.f32 %v735_v15  ;;  %v788_v43 = vrot.slane %v787_v34, 1 }
 0x1bd   : > { %v768_v52 = vadd.f32 %v767_v32, %v766_v20  ;;  %v822_v44 = vmul.f32 %v750_v35, %v1714_v8  ;;  %v839_v57 = vrot.slane %v838_v33, 1  ;;  %v858_v53 = vrot.slane %v857_v51, 2 }
 0x1be   : > { %v1251_v48 = vpop.eup %1250  ;;  %v772_v50 = vrot.slane %v771_v38, 2  ;;  %v790_v46 = vadd.f32 %v750_v35, %v749_v25  ;;  %v789_v42 = vadd.f32 %v788_v43, %v787_v34  ;;  %v833_v4 = vadd.f32 %v832_v27, %v831_v58  ;;  %v630_v49 = vpop.permute.xlu0 %629 }
 0x1bf   : > { %v884_v54 = vmax.f32 %v768_v52, 1e-30  ;;  %v745_v17 = vmul.f32 %v1251_v48, %v1770_v31  ;;  %v843_v5 = vadd.f32 %v842_v40, %v841_v28  ;;  %v840_v10 = vadd.f32 %v839_v57, %v838_v33 }
 0x1c0   : > { %v1253_v61 = vpop.eup %1252  ;;  %v773_v55 = vadd.f32 %v772_v50, %v771_v38  ;;  %v791_v36 = vrot.slane %v790_v46, 4  ;;  %v887_v8 = vmax.f32 %v789_v42, 1e-30  ;;  %v859_v9 = vadd.f32 %v858_v53, %v857_v51 }
 0x1c1   : > { %1260 = vrcp.f32 %v884_v54  ;;  %v746_v6 = vmul.f32 %v1253_v61, %v1768_v2  ;;  %v817_v63 = vmul.f32 %v745_v17, %v1748_v62  ;;  %v821_v58 = vmul.f32 %v749_v25, %v1702_v0 }
 0x1c2   : > { %v774_v56 = vrot.slane %v773_v55, 1  ;;  %v792_v11 = vadd.f32 %v791_v36, %v790_v46  ;;  %1262 = vrcp.f32 %v887_v8  ;;  %v844_v2 = vrot.slane %v843_v5, 2 }
 0x1c3   : > { %v1255_v19 = vpop.eup %1254  ;;  %v776_v31 = vadd.f32 %v746_v6, %v745_v17  ;;  %v818_v7 = vmul.f32 %v746_v6, %v1764_v16  ;;  %v862_v15 = vadd.f32 %v822_v44, %v821_v58  ;;  %v752_v1 = vmul.f32 %v1249_v41, %v623_v12 }
 0x1c4   : > { %v899_v13 = vmul.f32 %v1255_v19, %v833_v4  ;;  %v775_v14 = vadd.f32 %v774_v56, %v773_v55  ;;  %v793_v45 = vrot.slane %v792_v11, 2  ;;  %v860_v22 = vrot.slane %v859_v9, 1 }
 0x1c5   : > { %v777_v62 = vrot.slane %v776_v31, 4  ;;  %v848_v18 = vadd.f32 %v818_v7, %v817_v63  ;;  %v1257_v60 = vpop.eup %1256  ;;  %v751_v20 = vmul.f32 %v1247_v37, %v619_v29  ;;  %v863_v27 = vrot.slane %v862_v15, 4 }
 0x1c6   : > { %v885_v21 = vmax.f32 %v775_v14, 1e-30  ;;  %v794_v23 = vadd.f32 %v793_v45, %v792_v11  ;;  %v1259_v30 = vpop.eup %1258  ;;  %v824_v0 = vmul.f32 %v752_v1, %v1738_v39  ;;  %v845_v33 = vadd.f32 %v844_v2, %v843_v5 }
 0x1c7   : > { %v778_v16 = vadd.f32 %v777_v62, %v776_v31  ;;  %v849_v47 = vrot.slane %v848_v18, 4  ;;  %v797_v51 = vadd.f32 %v752_v1, %v751_v20  ;;  %v823_v32 = vmul.f32 %v751_v20, %v1726_v26 }
 0x1c8   : > { %1264 = vrcp.f32 %v885_v21  ;;  %v795_v28 = vrot.slane %v794_v23, 1  ;;  %v864_v35 = vadd.f32 %v863_v27, %v862_v15  ;;  %v754_v38 = vmul.f32 %v1257_v60, %v634_v24 }
 0x1c9   : > { %v779_v34 = vrot.slane %v778_v16, 2  ;;  %v798_v25 = vrot.slane %v797_v51, 4  ;;  %v869_v37 = vadd.f32 %v824_v0, %v823_v32  ;;  %v753_v41 = vmul.f32 %v1259_v30, %v630_v49 }
 0x1ca   : > { %v796_v40 = vadd.f32 %v795_v28, %v794_v23  ;;  %v861_v44 = vadd.f32 %v860_v22, %v859_v9  ;;  %v865_v48 = vrot.slane %v864_v35, 2  ;;  %v826_v39 = vmul.f32 %v754_v38, %v1766_v59 }
 0x1cb   : > { %v1261_v52 = vpop.eup %1260  ;;  %v780_v43 = vadd.f32 %v779_v34, %v778_v16  ;;  %v850_v50 = vadd.f32 %v849_v47, %v848_v18  ;;  %v799_v46 = vadd.f32 %v798_v25, %v797_v51  ;;  %v846_v26 = vrot.slane %v845_v33, 1 }
 0x1cc   : > { %v900_v57 = vmul.f32 %v1261_v52, %v840_v10  ;;  %v888_v53 = vmax.f32 %v796_v40, 1e-30  ;;  %v1263_v54 = vpop.eup %1262  ;;  %v870_v42 = vrot.slane %v869_v37, 4  ;;  %v804_v61 = vadd.f32 %v754_v38, %v753_v41 }
 0x1cd   : > { %v781_v17 = vrot.slane %v780_v43, 1  ;;  %v903_v55 = vmul.f32 %v1263_v54, %v861_v44  ;;  %v800_v5 = vrot.slane %v799_v46, 2  ;;  %v866_v6 = vadd.f32 %v865_v48, %v864_v35 }
 0x1ce   : > { %v916_v4 = vsel %vm915_vm0, %v900_v57, %v899_v13  ;;  %1266 = vrcp.f32 %v888_v53  ;;  %v851_v63 = vrot.slane %v850_v50, 2  ;;  %v805_v56 = vrot.slane %v804_v61, 4 }
 0x1cf   : > { %v782_v36 = vadd.f32 %v781_v17, %v780_v43  ;;  %v801_v8 = vadd.f32 %v800_v5, %v799_v46  ;;  %v825_v59 = vmul.f32 %v753_v41, %v1750_v3  ;;  %v847_v10 = vadd.f32 %v846_v26, %v845_v33 }
 0x1d0   : > { %v871_v11 = vadd.f32 %v870_v42, %v869_v37  ;;  %v806_v31 = vadd.f32 %v805_v56, %v804_v61  ;;  %v867_v29 = vrot.slane %v866_v6, 1  ;;  %v852_v13 = vadd.f32 %v851_v63, %v850_v50 }
 0x1d1   : > { %v886_v9 = vmax.f32 %v782_v36, 1e-30  ;;  %v802_v19 = vrot.slane %v801_v8, 1  ;;  %v876_v7 = vadd.f32 %v826_v39, %v825_v59 }
 0x1d2   : > { %v1265_v12 = vpop.eup %1264  ;;  %v807_v2 = vrot.slane %v806_v31, 2  ;;  %v872_v18 = vrot.slane %v871_v11, 2  ;;  %v868_v3 = vadd.f32 %v867_v29, %v866_v6  ;;  %v853_v22 = vrot.slane %v852_v13, 1 }
 0x1d3   : > { %v901_v58 = vmul.f32 %v1265_v12, %v847_v10  ;;  %1268 = vrcp.f32 %v886_v9  ;;  %v803_v14 = vadd.f32 %v802_v19, %v801_v8  ;;  %v877_v45 = vrot.slane %v876_v7, 4 }
 0x1d4   : > { %v808_v1 = vadd.f32 %v807_v2, %v806_v31  ;;  %v873_v24 = vadd.f32 %v872_v18, %v871_v11  ;;  %v854_v47 = vadd.f32 %v853_v22, %v852_v13 }
 0x1d5   : > { %v918_v62 = vsel %vm917_vm1, %v901_v58, %v916_v4  ;;  %v889_v15 = vmax.f32 %v803_v14, 1e-30  ;;  %v878_v60 = vadd.f32 %v877_v45, %v876_v7 }
 0x1d6   : > { %v809_v23 = vrot.slane %v808_v1, 1  ;;  %v874_v49 = vrot.slane %v873_v24, 1 }
 0x1d7   : > { %1270 = vrcp.f32 %v889_v15  ;;  %v879_v16 = vrot.slane %v878_v60, 2 }
 0x1d8   : > { %v1267_v21 = vpop.eup %1266  ;;  %v810_v30 = vadd.f32 %v809_v23, %v808_v1  ;;  %v875_v33 = vadd.f32 %v874_v49, %v873_v24 }
 0x1d9   : > { %v904_v20 = vmul.f32 %v1267_v21, %v868_v3  ;;  %v880_v51 = vadd.f32 %v879_v16, %v878_v60 }
 0x1da   : > { %v890_v27 = vmax.f32 %v810_v30, 1e-30 }
 0x1db   : > { %v881_v25 = vrot.slane %v880_v51, 1 }
 0x1dc   : > { %1272 = vrcp.f32 %v890_v27 }
 0x1dd   : > { %v1269_v0 = vpop.eup %1268  ;;  %v882_v41 = vadd.f32 %v881_v25, %v880_v51 }
 0x1de   : > { %v902_v28 = vmul.f32 %v1269_v0, %v854_v47 }
 0x1e0   : > { %v920_v32 = vsel %vm919_vm2, %v902_v28, %v918_v62 }
 0x1e1   : > { %v922_v34 = vsel %vm921_vm3, %v903_v55, %v920_v32  ;;  %v1271_v35 = vpop.eup %1270 }
 0x1e2   : > { %v924_v38 = vsel %vm923_vm4, %v904_v20, %v922_v34  ;;  %v905_v40 = vmul.f32 %v1271_v35, %v875_v33 }
 0x1e4   : > { %v926_v37 = vsel %vm925_vm5, %v905_v40, %v924_v38 }
 0x1e6   : > { %v1273_v52 = vpop.eup %1272 }
 0x1e7   : > { %v906_v43 = vmul.f32 %v1273_v52, %v882_v41 }
 0x1e9   : > { %v928_v44 = vsel %vm927_vm6, %v906_v43, %v926_v37 }
 0x1ea   : > { %930 = vst [vmem:[%s238_s6] sm:$0xff] %v928_v44 }
 0x1eb   : > { %1375 = shalt.err (!%p1372_p1)
}
 0x1ec   : > { %s1376_s10 = scalar_lea.hbm %s1811_s28, 128  ;;  %s1380_s5 = scalar_lea.hbm %s1858_s3, 256 }
 0x1ed   : > { %p1377_p5 = scmp.ne.s32.totalorder %s1811_s28, %s1376_s10  ;;  %p1381_p3 = scmp.lt.u32.totalorder %s1811_s28, %s1858_s3 }
 0x1ee   : > { %p1382_p10 = scmp.lt.u32.totalorder %s1380_s5, %s1376_s10  ;;  %p1384_p9 = scmp.lt.u32.totalorder %s1376_s10, %s1811_s28 }
 0x1ef   : > { %p1378_p11 = pnand %p1377_p5, %p1877_p12 }
 0x1f0   : > { %p1383_p7 = por %p1382_p10, %p1381_p3 }
 0x1f1   : > { %p1379_p8 = pneg %p1378_p11 }
 0x1f2   : > { %p1385_p13 = por %p1384_p9, %p1383_p7 }
 0x1f4   : > { %p1386_p6 = pnand %p1385_p13, %p1379_p8 }
 0x1f6   : > { %1389 = shalt.err (!%p1386_p6)
}
 0x1f7   : > { %1146 = dma.vmem_to_hbm [thread:$0]  (%p1877_p12), %s1813_s7, 128, %s1811_s28, %s932_s21  }
 0x1f8 PF: > { %s957_s22 = sand.u32 1, %s1424_s12   ;;  %p1878_p2 = scmp.ne.s32.totalorder %s1868_s27, 0 }
 0x1f9   : > { %p1879_p0 = scmp.ge.s32.totalorder %s1436_s15, 2  ;;  %s958_s4 = scalar_lea.sflag [#allocation4], %s957_s22 }
 0x1fb   : > { %p1160_p4 = pnand %p1879_p0, %p1878_p2 }
 0x1fd   : > { %1419 = dma.done.wait (!%p1160_p4), %s958_s4, 128  }
 0x1fe   : > { %1421 = vsyncadd (!%p1160_p4), %s958_s4, 4294967168  ;;  %p17_p1 = scmp.ge.s32.totalorder %s1485_s16, 4   ;;  %s1880_s12 = smov %s1428_s13 }
 0x1ff   : > { %s1881_s13 = smov %s1432_s14  ;;  %s1882_s14 = smov %s1494_s19 }
 0x200   : > { %s1883_s15 = smov %s1485_s16  ;;  %19 = sbr.rel (!%p17_p1) target bundleno = 6 (0x6), region = 92 }
 0x207   :  { %963 = vsyncpa [#allocation3], 1 }
 0x208   :  { %965 = vsyncpa [#allocation3 + $0x1], 1 }
 0x209   :  { %966 = vsyncpa [#allocation6], 1 }
 0x20a   :  { %967 = vsyncpa [#allocation4], 1 }
 0x20b   :  { %969 = vsyncpa [#allocation4 + $0x1], 1 }

</bundles_post_ra>
